<compile_context>
chip_gen: v6e
topology: v6e:2x2x1
jax: 0.10.0
libtpu: 0.0.40
codegen_flags: <defaults>
</compile_context>

<pallas_src>
import functools

import jax
import jax.numpy as jnp
from jax.experimental import pallas as pl
from jax.experimental.pallas import tpu as pltpu


def _ae_kernel(x_ref, we_ref, be_ref, wd_ref, bd_ref, out_ref):
    # Cast the native-dtype input tile to the MXU dtype in-kernel (VPU cast is
    # free under the DMA; avoids a separate HBM cast pass in the wrapper).
    x = x_ref[...].astype(we_ref.dtype)                                # [tb, D]
    # Encoder: Linear (bf16 MXU, f32 accumulate) + bias + ReLU in f32.
    z = jnp.dot(x, we_ref[...], preferred_element_type=jnp.float32)    # [tb, E] f32
    z = jnp.maximum(z + be_ref[...], 0.0)
    # Decoder: Linear (bf16 MXU, f32 accumulate) + bias + Sigmoid in f32.
    # (bf16 z is a ~1e-2-level deviation vs the f32 PyTorch module; acceptable
    #  for inference -- keep z in f32 here if tighter accuracy is required.)
    z = z.astype(wd_ref.dtype)
    y = jnp.dot(z, wd_ref[...], preferred_element_type=jnp.float32)    # [tb, D] f32
    t = y + bd_ref[...]
    # sigmoid(t) = 1 / (1 + exp(-t)): exp and reciprocal both go to the EUP
    # slot, keeping the VALU free.
    e = jnp.exp(-t)
    out_ref[...] = pl.reciprocal(1.0 + e, approx=True).astype(out_ref.dtype)


def _round_up(n, m):
    return ((int(n) + m - 1) // m) * m


def _vmem_estimate(tb, D, E, x_bytes, io_bytes):
    """VMEM footprint estimate for one pipelined grid step (bytes)."""
    return int(
        2 * tb * D * x_bytes          # double-buffered x tiles (native dtype)
        + 2 * tb * D * io_bytes       # double-buffered out tiles (bf16)
        + 2 * 2 * D * E * io_bytes    # enc + dec weights (bf16), double-buffered
        + 2 * 2 * (D + E) * 4         # biases (f32), double-buffered
        + tb * (D + E) * 4            # f32 intermediates z, y
        + tb * (D + E) * io_bytes     # bf16 temporaries (x cast, z cast)
        + (2 << 20)                   # compiler scratch headroom
    )


def prepare_ae_params(w_enc, b_enc, w_dec, b_dec, io_dtype=jnp.bfloat16):
    """One-time parameter prep (hoisted out of the per-call wrapper).

    Weights are stored [in_features, out_features] so the kernel computes
    x @ W + b (== PyTorch x @ W.T with W of shape [out, in]).
    """
    D, E = w_enc.shape
    assert w_dec.shape == (E, D)
    we = jnp.asarray(w_enc, io_dtype)
    wd = jnp.asarray(w_dec, io_dtype)
    be = jnp.asarray(b_enc, jnp.float32).reshape(1, E)
    bd = jnp.asarray(b_dec, jnp.float32).reshape(1, D)
    return we, be, wd, bd


def ae_forward(x, params, *, tile_b=4096, out_dtype=jnp.bfloat16):
    """Fused AENetwork forward: sigmoid(relu(x @ We + be) @ Wd + bd).

    x is flattened to (-1, input_dim) (mirrors x.view(-1, input_dim)) and read
    in its native dtype; output is [B, input_dim] in `out_dtype`.
    """
    we, be, wd, bd = params
    D, E = we.shape
    x = x.reshape(-1, D)
    B = x.shape[0]
    assert D % 128 == 0, "input_dim must be a multiple of 128 for lane-dense I/O"

    x_bytes = jnp.dtype(x.dtype).itemsize
    io_bytes = jnp.dtype(out_dtype).itemsize

    # Generation-aware VMEM budget (v7x: 64 MiB physical; v5e/v6e: 128 MiB).
    try:
        vmem_cap = int(pltpu.get_tpu_info().vmem_capacity_bytes)
    except Exception:
        vmem_cap = 64 << 20
    budget = max(16 << 20, vmem_cap - (8 << 20))

    SUB = 16  # sublane pack (covers bf16 packing; also a multiple of f32's 8)
    tb = int(max(SUB, tile_b))
    # Keep >= 2 grid steps when the batch allows it (v7x megacore: 2 TCs).
    if B >= 2 * SUB:
        tb = min(tb, _round_up(pl.cdiv(B, 2), SUB))
    # Shrink the tile until the (intermediate-inclusive) VMEM estimate fits.
    while tb > SUB and _vmem_estimate(tb, D, E, x_bytes, io_bytes) > budget:
        tb = max(SUB, ((tb // 2) // SUB) * SUB)
    if tb >= B:
        tb = B                       # single block == full dim: always legal
    else:
        tb = max(SUB, (tb // SUB) * SUB)

    grid = (int(pl.cdiv(B, tb)),)
    vmem_bytes = min(_vmem_estimate(tb, D, E, x_bytes, io_bytes), budget)

    cost = pl.CostEstimate(
        flops=4 * B * D * E,                      # two matmuls, 2*B*D*E each
        transcendentals=B * D,                    # sigmoid exp (+ cheap recip)
        bytes_accessed=(B * D * (x_bytes + io_bytes)
                        + 2 * D * E * io_bytes
                        + (D + E) * 4),
    )

    return pl.pallas_call(
        _ae_kernel,
        out_shape=jax.ShapeDtypeStruct((B, D), out_dtype),
        grid_spec=pltpu.PrefetchScalarGridSpec(
            num_scalar_prefetch=0,
            grid=grid,
            in_specs=[
                pl.BlockSpec((tb, D), lambda i: (i, 0)),   # x tile over batch
                pl.BlockSpec((D, E), lambda i: (0, 0)),    # encoder weight (resident)
                pl.BlockSpec((1, E), lambda i: (0, 0)),    # encoder bias (f32)
                pl.BlockSpec((E, D), lambda i: (0, 0)),    # decoder weight (resident)
                pl.BlockSpec((1, D), lambda i: (0, 0)),    # decoder bias (f32)
            ],
            out_specs=pl.BlockSpec((tb, D), lambda i: (i, 0)),
        ),
        compiler_params=pltpu.CompilerParams(
            dimension_semantics=("parallel",),
            vmem_limit_bytes=int(vmem_bytes)),
        cost_estimate=cost,
    )(x, we, be, wd, bd)


def init_linear(key, fan_in, fan_out):
    """Deterministic PyTorch-style nn.Linear init (uniform +/- 1/sqrt(fan_in)).
    Weight returned as [fan_in, fan_out] so the kernel uses x @ W."""
    kw, kb = jax.random.split(key)
    bound = 1.0 / jnp.sqrt(fan_in)
    w = jax.random.uniform(kw, (fan_in, fan_out), jnp.float32, -bound, bound)
    b = jax.random.uniform(kb, (fan_out,), jnp.float32, -bound, bound)
    return w, b


if __name__ == "__main__":
    # Small shapes consistent with the module: an NCHW-like input that gets
    # flattened to (-1, input_dim) inside forward().
    input_dim = 256            # 16 * 16
    embedding_size = 32

    key = jax.random.PRNGKey(0)
    kx, ke, kd = jax.random.split(key, 3)

    x_nchw = jax.random.normal(kx, (2, 4, 16, 16), jnp.float32)    # [B, C, H, W]
    x_flat = x_nchw.reshape(-1, input_dim)                         # [8, 256]

    w_enc, b_enc = init_linear(ke, input_dim, embedding_size)
    w_dec, b_dec = init_linear(kd, embedding_size, input_dim)

    # One-time parameter prep (casts hoisted out of the forward call).
    params = prepare_ae_params(w_enc, b_enc, w_dec, b_dec)

    fwd = functools.partial(ae_forward, params=params)
    out = jax.block_until_ready(fwd(x_flat))
    assert out.shape == (8, input_dim)

    # Reference check in plain JAX using the same bf16-rounded weights/inputs
    # (kernel accumulates in f32; tolerance covers the final bf16 output cast
    #  and the approximate EUP reciprocal).
    xb = x_flat.astype(jnp.bfloat16).astype(jnp.float32)
    web = w_enc.astype(jnp.bfloat16).astype(jnp.float32)
    wdb = w_dec.astype(jnp.bfloat16).astype(jnp.float32)
    z_ref = jnp.maximum(xb @ web + b_enc, 0.0)
    zb = z_ref.astype(jnp.bfloat16).astype(jnp.float32)
    y_ref = jax.nn.sigmoid(zb @ wdb + b_dec)
    assert jnp.allclose(out.astype(jnp.float32), y_ref, atol=2e-2, rtol=2e-2)

    print("KERNEL_OK")
</pallas_src>

<mosaic_0001>
module attributes {stable_mosaic.version = 11 : i64} {
  func.func @_ae_kernel(%arg0: i32, %arg1: memref<8x256xf32, #tpu.memory_space<vmem>>, %arg2: memref<256x32xbf16, #tpu.memory_space<vmem>>, %arg3: memref<1x32xf32, #tpu.memory_space<vmem>>, %arg4: memref<32x256xbf16, #tpu.memory_space<vmem>>, %arg5: memref<1x256xf32, #tpu.memory_space<vmem>>, %arg6: memref<8x256xbf16, #tpu.memory_space<vmem>>) attributes {dimension_semantics = [#tpu.dimension_semantics<parallel>], iteration_bounds = array<i64: 1>, scalar_prefetch = 0 : i64, scratch_operands = 0 : i64, tpu.core_type = #tpu.core_type<tc>, window_params = [{transform_indices = @transform_0, window_bounds = array<i64: 8, 256>}, {pipeline_mode = #tpu.pipeline_mode<synchronous>, transform_indices = @transform_1, window_bounds = array<i64: 256, 32>}, {pipeline_mode = #tpu.pipeline_mode<synchronous>, transform_indices = @transform_2, window_bounds = array<i64: 1, 32>}, {pipeline_mode = #tpu.pipeline_mode<synchronous>, transform_indices = @transform_3, window_bounds = array<i64: 32, 256>}, {pipeline_mode = #tpu.pipeline_mode<synchronous>, transform_indices = @transform_4, window_bounds = array<i64: 1, 256>}, {transform_indices = @transform_5, window_bounds = array<i64: 8, 256>}]} {
    %c0 = arith.constant 0 : index
    %c0_0 = arith.constant 0 : index
    %0 = vector.load %arg1[%c0, %c0_0] : memref<8x256xf32, #tpu.memory_space<vmem>>, vector<8x256xf32>
    %1 = arith.truncf %0 : vector<8x256xf32> to vector<8x256xbf16>
    %c0_1 = arith.constant 0 : index
    %c0_2 = arith.constant 0 : index
    %2 = vector.load %arg2[%c0_1, %c0_2] : memref<256x32xbf16, #tpu.memory_space<vmem>>, vector<256x32xbf16>
    %cst = arith.constant dense<0.000000e+00> : vector<8x32xf32>
    %3 = tpu.matmul %1, %2, %cst {dimension_numbers = #tpu.dot_dimension_numbers<[1], [0], [0], [1], [0, 0, 1, 1], [], []>} : vector<8x256xbf16>, vector<256x32xbf16>, vector<8x32xf32> -> vector<8x32xf32>
    %c0_3 = arith.constant 0 : index
    %c0_4 = arith.constant 0 : index
    %4 = vector.load %arg3[%c0_3, %c0_4] : memref<1x32xf32, #tpu.memory_space<vmem>>, vector<1x32xf32>
    %5 = vector.broadcast %4 : vector<1x32xf32> to vector<8x32xf32>
    %6 = arith.addf %3, %5 : vector<8x32xf32>
    %cst_5 = arith.constant 0.000000e+00 : f32
    %7 = vector.broadcast %cst_5 : f32 to vector<8x32xf32>
    %8 = arith.maximumf %6, %7 : vector<8x32xf32>
    %9 = arith.truncf %8 : vector<8x32xf32> to vector<8x32xbf16>
    %c0_6 = arith.constant 0 : index
    %c0_7 = arith.constant 0 : index
    %10 = vector.load %arg4[%c0_6, %c0_7] : memref<32x256xbf16, #tpu.memory_space<vmem>>, vector<32x256xbf16>
    %cst_8 = arith.constant dense<0.000000e+00> : vector<8x256xf32>
    %11 = tpu.matmul %9, %10, %cst_8 {dimension_numbers = #tpu.dot_dimension_numbers<[1], [0], [0], [1], [0, 0, 1, 1], [], []>} : vector<8x32xbf16>, vector<32x256xbf16>, vector<8x256xf32> -> vector<8x256xf32>
    %c0_9 = arith.constant 0 : index
    %c0_10 = arith.constant 0 : index
    %12 = vector.load %arg5[%c0_9, %c0_10] : memref<1x256xf32, #tpu.memory_space<vmem>>, vector<1x256xf32>
    %13 = vector.broadcast %12 : vector<1x256xf32> to vector<8x256xf32>
    %14 = arith.addf %11, %13 : vector<8x256xf32>
    %cst_11 = arith.constant 0.000000e+00 : f32
    %15 = vector.broadcast %cst_11 : f32 to vector<8x256xf32>
    %16 = arith.subf %15, %14 : vector<8x256xf32>
    %17 = math.exp %16 : vector<8x256xf32>
    %cst_12 = arith.constant 1.000000e+00 : f32
    %18 = vector.broadcast %cst_12 : f32 to vector<8x256xf32>
    %19 = arith.addf %18, %17 : vector<8x256xf32>
    %20 = tpu.reciprocal %19 {approx = true} : vector<8x256xf32> -> vector<8x256xf32>
    %21 = arith.truncf %20 : vector<8x256xf32> to vector<8x256xbf16>
    %c0_13 = arith.constant 0 : index
    %c0_14 = arith.constant 0 : index
    %22 = vector.load %arg6[%c0_13, %c0_14] : memref<8x256xbf16, #tpu.memory_space<vmem>>, vector<8x256xbf16>
    tpu.vector_store %arg6[%c0_13, %c0_14], %21 {strides = array<i32>} : memref<8x256xbf16, #tpu.memory_space<vmem>>, vector<8x256xbf16>,
    return
  }
  func.func @transform_0(%arg0: i32) -> (i32, i32) {
    %c0_i32 = arith.constant 0 : i32
    %c0_i32_0 = arith.constant 0 : i32
    return %arg0, %c0_i32 : i32, i32
  }
  func.func @transform_1(%arg0: i32) -> (i32, i32) {
    %c0_i32 = arith.constant 0 : i32
    %c0_i32_0 = arith.constant 0 : i32
    %c0_i32_1 = arith.constant 0 : i32
    return %c0_i32, %c0_i32_0 : i32, i32
  }
  func.func @transform_2(%arg0: i32) -> (i32, i32) {
    %c0_i32 = arith.constant 0 : i32
    %c0_i32_0 = arith.constant 0 : i32
    %c0_i32_1 = arith.constant 0 : i32
    return %c0_i32, %c0_i32_0 : i32, i32
  }
  func.func @transform_3(%arg0: i32) -> (i32, i32) {
    %c0_i32 = arith.constant 0 : i32
    %c0_i32_0 = arith.constant 0 : i32
    %c0_i32_1 = arith.constant 0 : i32
    return %c0_i32, %c0_i32_0 : i32, i32
  }
  func.func @transform_4(%arg0: i32) -> (i32, i32) {
    %c0_i32 = arith.constant 0 : i32
    %c0_i32_0 = arith.constant 0 : i32
    %c0_i32_1 = arith.constant 0 : i32
    return %c0_i32, %c0_i32_0 : i32, i32
  }
  func.func @transform_5(%arg0: i32) -> (i32, i32) {
    %c0_i32 = arith.constant 0 : i32
    %c0_i32_0 = arith.constant 0 : i32
    return %arg0, %c0_i32 : i32, i32
  }
}

</mosaic_0001>

<bundles_post_ra>
// kernel: tpu_custom_call.1
= control target key start
LH: loop header
LB: loop body
LE: loop exit
PB: predicated region body
PF: predicated region fallthrough
CT: control target
= control target key end

     0   :  { %s524_s0 = inlined_call_operand.vmem [shape: f32[8,256], index: 0, kind: input, shape index: {}]   ;;  %s525_s1 = inlined_call_operand.vmem [shape: bf16[256,32], index: 1, kind: input, shape index: {}]   ;;  %s526_s2 = inlined_call_operand.vmem [shape: f32[1,32], index: 2, kind: input, shape index: {}]   ;;  %s527_s3 = inlined_call_operand.vmem [shape: bf16[32,256], index: 3, kind: input, shape index: {}]   ;;  %s528_s4 = inlined_call_operand.vmem [shape: f32[1,256], index: 4, kind: input, shape index: {}]   ;;  %s529_s5 = inlined_call_operand.hbm [shape: bf16[8,256], index: 5, kind: output, shape index: {}]  }
   0x1   :  { %v365_v0 = vld [vmem:[%s525_s1 + $0x78] sm:$0xff]   ;;  %v367_v2 = vld [vmem:[%s525_s1 + $0x70] sm:$0xff]   ;;  %v369_v4 = vld [vmem:[%s525_s1 + $0x68] sm:$0xff]  }
   0x2   :  { %v366_v1 = vld [vmem:[%s525_s1 + $0x38] sm:$0xff]   ;;  %341 = vmatprep.subr.bf16.mxu0 %v365_v0  ;;  %v368_v3 = vld [vmem:[%s525_s1 + $0x30] sm:$0xff]   ;;  %v370_v5 = vld [vmem:[%s525_s1 + $0x28] sm:$0xff]  }
   0x3   :  { %342 = vmatpush3.bf16.msra.mxu0 %v366_v1  ;;  %v371_v6 = vld [vmem:[%s525_s1 + $0x60] sm:$0xff]   ;;  %v373_v8 = vld [vmem:[%s525_s1 + $0x58] sm:$0xff]   ;;  %v375_v10 = vld [vmem:[%s525_s1 + $0x50] sm:$0xff]  }
   0x4   :  { %343 = vmatprep.subr.bf16.mxu0 %v367_v2  ;;  %v372_v7 = vld [vmem:[%s525_s1 + $0x20] sm:$0xff]   ;;  %v374_v9 = vld [vmem:[%s525_s1 + $0x18] sm:$0xff]   ;;  %v23_v11 = vld [vmem:[%s524_s0 + $0x8] sm:$0xff] }
   0x5   :  { %v25_v12 = vpack.c.bf16 %v23_v11, %v23_v11 }
   0x7   :  { %344 = vmatpush3.bf16.msra.mxu0 %v368_v3 }
   0x8   :  { %345 = vmatprep.subr.bf16.mxu0 %v369_v4 }
   0xb   :  { %346 = vmatpush3.bf16.msra.mxu0 %v370_v5 }
   0xc   :  { %347 = vmatprep.subr.bf16.mxu0 %v371_v6 }
   0xf   :  { %348 = vmatpush3.bf16.msra.mxu0 %v372_v7 }
  0x10   :  { %349 = vmatprep.subr.bf16.mxu0 %v373_v8 }
  0x11   :  { %10 = vsyncpa [#allocation3], 0  ;;  %v376_v13 = vld [vmem:[%s525_s1 + $0x10] sm:$0xff]   ;;  %193 = vmatprep.mubr.bf16.mxu0 %v25_v12  ;;  %v377_v14 = vld [vmem:[%s525_s1 + $0x48] sm:$0xff]   ;;  %v417_v24 = vmov 0   ;;  %vm239_vm0 = vcmask 261120   ;;  %v209_v34 = vlaneseq }
  0x12   :  { %v378_v15 = vld [vmem:[%s525_s1 + $0x8] sm:$0xff]   ;;  %v379_v16 = vld [vmem:[%s525_s1 + $0x40] sm:$0xff]   ;;  %v381_v20 = vld [vmem:[%s527_s3 + $0x14] ss:$8 sps:$4 sm:$0xff]   ;;  %275 = vmatprep.mubr.bf16.mxu1 %v417_v24 }
  0x13   :  { %350 = vmatpush3.bf16.msra.mxu0 %v374_v9  ;;  %v380_v17 = vld [vmem:[%s525_s1] sm:$0xff]   ;;  %v383_v21 = vld [vmem:[%s527_s3 + $0x10] ss:$8 sps:$4 sm:$0xff]   ;;  %255 = vmatprep.subr.bf16.mxu1 %v381_v20  ;;  %v210_v35 = vshrl.u32 %v209_v34, 7 }
  0x14   :  { %351 = vmatprep.subr.bf16.mxu0 %v375_v10  ;;  %v22_v18 = vld [vmem:[%s524_s0] sm:$0xff]  ;;  %256 = vmatpush1.bf16.msra.mxu1 %v383_v21 }
  0x15   :  { %v24_v19 = vpack.c.bf16 %v22_v18, %v22_v18  ;;  %v384_v22 = vld [vmem:[%s527_s3 + $0x4] ss:$8 sps:$4 sm:$0xff]   ;;  %v386_v23 = vld [vmem:[%s527_s3] ss:$8 sps:$4 sm:$0xff]   ;;  %v211_v36 = vsub.s32 0, %v210_v35  ;;  %v215_v38 = vsub.s32 1, %v210_v35 }
  0x16   :  { %257 = vmatprep.subr.bf16.mxu1 %v384_v22  ;;  %v317_v26 = vld [vmem:[%s526_s2] ss:$0 sm:$0xff]  ;;  %s418_s2 = smov [#allocation2]  }
  0x17   :  { %352 = vmatpush3.bf16.msra.mxu0 %v376_v13  ;;  %v207_v37 = vld [vmem:[%s528_s4] sm:$0x3]  ;;  %s309_s4 = sshll.u32 %s418_s2, 4  ;;  %s310_s4 = int_to_ptr.vmem [resolvable:$true] %s309_s4 }
  0x18   :  { %353 = vmatprep.subr.bf16.mxu0 %v377_v14  ;;  %258 = vmatpush1.bf16.msra.mxu1 %v386_v23  ;;  %v212_v39 = vrot.slane %v207_v37, %v211_v36  ;;  %v216_v40 = vrot.slane %v207_v37, %v215_v38  ;;  %s395_s13 = scalar_lea.vmem %s310_s4, 128  ;;  %p400_p1 = scmp.lt.s32.totalorder %s310_s4, %s310_s4 }
  0x19   :  { %p396_p0 = scmp.ne.s32.totalorder %s310_s4, %s395_s13  ;;  %p401_p2 = scmp.lt.s32.totalorder %s395_s13, %s395_s13 }
  0x1b   :  { %354 = vmatpush3.bf16.msra.mxu0 %v378_v15  ;;  %p402_p3 = por %p401_p2, %p400_p1 }
  0x1c   :  { %355 = vmatprep.subr.bf16.mxu0 %v379_v16 }
  0x1d   :  { %p403_p4 = pnand %p402_p3, %p396_p0 }
  0x1f   :  { %356 = vmatpush3.bf16.msra.mxu0 %v380_v17 }
  0x22   :  { %194 = vmatmul.mubr.bf16.vlgmr.msra.gmra.mxu0 %v24_v19 }
  0xe2   :  { %v357_v25 = vpop.f32.mrf.mxu0 }
  0xe4   :  { %v358_v27 = vpop.f32.mrf.mxu0 }
  0xe5   :  { %v359_v28 = vadd.f32 %v358_v27, %v357_v25 }
  0xe6   :  { %v360_v29 = vpop.f32.mrf.mxu0 }
  0xe7   :  { %v196_v30 = vadd.f32 %v359_v28, %v317_v26 }
  0xe8   :  { %v361_v31 = vpop.f32.mrf.mxu0 }
  0xe9   :  { %v201_v32 = vmax.f32 %v196_v30, 0.0 }
  0xeb   :  { %v202_v33 = vpack.c.bf16 %v201_v32, %v201_v32 }
  0xed   :  { %338 = vmatmul.mubr.msk.bf16.vlgmr.msra.gmra.mxu1 %vm239_vm0, %v202_v33 }
 0x1ad   :  { %v277_v41 = vpop.f32.mrf.mxu1 }
 0x1ae   :  { %v278_v42 = vadd.f32 %v277_v41, %v212_v39 }
 0x1af   :  { %v279_v43 = vpop.f32.mrf.mxu1 }
 0x1b0   :  { %v284_v44 = vsub.f32 0.0, %v278_v42  ;;  %v280_v45 = vadd.f32 %v279_v43, %v216_v40 }
 0x1b1   :  { %v281_v46 = vpop.f32.mrf.mxu1 }
 0x1b2   :  { %v286_v47 = vmul.f32 1.442695, %v284_v44  ;;  %v285_v48 = vsub.f32 0.0, %v280_v45 }
 0x1b3   :  { %v282_v49 = vpop.f32.mrf.mxu1 }
 0x1b4   :  { %387 = vpow2.f32 %v286_v47  ;;  %v288_v50 = vmul.f32 1.442695, %v285_v48 }
 0x1b6   :  { %389 = vpow2.f32 %v288_v50 }
 0x1c1   :  { %v388_v51 = vpop.eup %387 }
 0x1c2   :  { %v290_v52 = vadd.f32 1.0, %v388_v51 }
 0x1c3   :  { %v390_v53 = vpop.eup %389 }
 0x1c4   :  { %v291_v54 = vadd.f32 1.0, %v390_v53  ;;  %391 = vrcp.f32 %v290_v52 }
 0x1c6   :  { %393 = vrcp.f32 %v291_v54 }
 0x1d1   :  { %v392_v55 = vpop.eup %391 }
 0x1d3   :  { %v394_v56 = vpop.eup %393 }
 0x1d4   :  { %v340_v57 = vpack.c.bf16 %v394_v56, %v392_v55 }
 0x1d6   :  { %302 = vst [vmem:[#allocation2] sm:$0xff] %v340_v57 }
 0x1d7   :  { %406 = shalt.err (!%p403_p4)
}
 0x1d8   :  { %312 = dma.vmem_to_hbm [thread:$0]  %s310_s4, 128, %s529_s5, [#allocation3]  }
 0x1d9   :  { %415 = dma.done.wait [#allocation3], 128  }
 0x1da   :  { %416 = vsyncadd [#allocation3], 4294967168 }
 0x1db   :  { %316 = vsyncpa [#allocation3], 1 }

</bundles_post_ra>
